<compile_context>
chip_gen: v6e
topology: v6e:2x2x1
jax: 0.10.0
libtpu: 0.0.40
codegen_flags: <defaults>
</compile_context>

<pallas_src>
import functools

import jax
import jax.numpy as jnp
from jax.experimental import pallas as pl
from jax.experimental.pallas import tpu as pltpu


_NEG_LARGE = -0.7 * float(jnp.finfo(jnp.float32).max)  # finite "-inf" sentinel


def _round_up(x, m):
    return ((x + m - 1) // m) * m


def _ce_label_smooth_kernel(x_ref, lbl_ref, out_ref,
                            m_ref, s_ref, sumx_ref, xy_ref,
                            *, num_classes, epsilon, tile_k, mask_classes):
    """Grid = (batch_tiles, class_tiles); class axis is the reduction axis."""
    k = pl.program_id(1)
    nk = pl.num_programs(1)

    @pl.when(k == 0)
    def _init():
        m_ref[...] = jnp.full_like(m_ref, _NEG_LARGE)   # running max
        s_ref[...] = jnp.zeros_like(s_ref)              # running sum of exp
        sumx_ref[...] = jnp.zeros_like(sumx_ref)        # running sum_k x
        xy_ref[...] = jnp.zeros_like(xy_ref)            # gathered x[b, y_b]

    x = x_ref[...].astype(jnp.float32)                  # (TILE_B, TILE_K)
    labels = lbl_ref[...]                               # (TILE_B, 1) int32
    class_ids = k * tile_k + jax.lax.broadcasted_iota(jnp.int32, x.shape, 1)

    if mask_classes:
        # Last class tile contains padded lanes beyond num_classes.
        valid = class_ids < num_classes
        x_lse = jnp.where(valid, x, _NEG_LARGE)
        x_sum = jnp.where(valid, x, 0.0)
    else:
        x_lse = x
        x_sum = x

    # --- online logsumexp over the class axis ---
    m_old = m_ref[...]
    m_new = jnp.maximum(m_old, jnp.max(x_lse, axis=1, keepdims=True))
    s_ref[...] = (s_ref[...] * jnp.exp(m_old - m_new)
                  + jnp.sum(jnp.exp(x_lse - m_new), axis=1, keepdims=True))
    m_ref[...] = m_new

    # --- running sum of logits (uniform-smoothing term) ---
    sumx_ref[...] += jnp.sum(x_sum, axis=1, keepdims=True)

    # --- gather x[b, label_b] via one-hot compare within this class tile ---
    xy_ref[...] += jnp.sum(jnp.where(class_ids == labels, x, 0.0),
                           axis=1, keepdims=True)

    @pl.when(k == nk - 1)
    def _finalize():
        lse = m_ref[...] + jnp.log(s_ref[...])          # per-row logsumexp
        out_ref[...] = (lse
                        - (1.0 - epsilon) * xy_ref[...]
                        - (epsilon / num_classes) * sumx_ref[...])


def cross_entropy_label_smooth(inputs, targets, num_classes, epsilon=0.1,
                               tile_b=None, tile_k=None):
    """inputs: (B, K) float logits (f32 or bf16), targets: (B,) int labels.

    Returns the scalar f32 label-smoothed cross-entropy loss
    (matches (-smoothed_targets * log_softmax(inputs)).mean(0).sum()).
    """
    B, K = inputs.shape
    assert K == num_classes, (K, num_classes)

    # --- tile selection: lanes multiple of 128, sublanes multiple of 8 ---
    if tile_k is None:
        tile_k = min(_round_up(K, 128), 2048)
    else:
        tile_k = _round_up(tile_k, 128)
    tile_k = min(tile_k, _round_up(K, 128))
    K_pad = _round_up(K, tile_k)
    nk = K_pad // tile_k

    if tile_b is None:
        tile_b = min(_round_up(B, 8), 256)
    else:
        tile_b = _round_up(tile_b, 8)
    tile_b = min(tile_b, _round_up(B, 8))
    B_pad = _round_up(B, tile_b)
    nb = B_pad // tile_b

    # --- pad inputs to tile multiples (padded rows sliced off afterwards,
    #     padded classes masked inside the kernel) ---
    x = inputs
    if (B_pad, K_pad) != (B, K):
        x = jnp.pad(x, ((0, B_pad - B), (0, K_pad - K)))
    labels = targets.astype(jnp.int32).reshape(B, 1)
    if B_pad != B:
        labels = jnp.pad(labels, ((0, B_pad - B), (0, 0)))

    kernel = functools.partial(
        _ce_label_smooth_kernel,
        num_classes=num_classes,
        epsilon=float(epsilon),
        tile_k=tile_k,
        mask_classes=(K_pad != K),
    )

    itemsize = jnp.dtype(inputs.dtype).itemsize
    cost = pl.CostEstimate(
        flops=5 * B_pad * K_pad,
        transcendentals=B_pad * K_pad,
        bytes_accessed=B_pad * K_pad * itemsize + B_pad * 4 + B_pad * 4,
    )
    # Double-buffered input tile (+ f32 working copy) with headroom; safe on
    # v5e (16 MiB scoped default), v6e (32 MiB / 128 MiB) and v7x (32 / 64 MiB).
    tile_bytes = tile_b * tile_k * (2 * itemsize + 4)
    vmem_limit = int(min(max(4 * tile_bytes, 32 * 1024 * 1024),
                         64 * 1024 * 1024))

    grid_spec = pltpu.PrefetchScalarGridSpec(
        num_scalar_prefetch=0,
        grid=(nb, nk),
        in_specs=[
            pl.BlockSpec((tile_b, tile_k), lambda b, k: (b, k)),
            pl.BlockSpec((tile_b, 1), lambda b, k: (b, 0)),
        ],
        out_specs=pl.BlockSpec((tile_b, 1), lambda b, k: (b, 0)),
        scratch_shapes=[
            pltpu.VMEM((tile_b, 1), jnp.float32),   # running max
            pltpu.VMEM((tile_b, 1), jnp.float32),   # running sum of exp
            pltpu.VMEM((tile_b, 1), jnp.float32),   # running sum of logits
            pltpu.VMEM((tile_b, 1), jnp.float32),   # gathered x[b, y]
        ],
    )

    per_row = pl.pallas_call(
        kernel,
        out_shape=jax.ShapeDtypeStruct((B_pad, 1), jnp.float32),
        grid_spec=grid_spec,
        compiler_params=pltpu.CompilerParams(
            dimension_semantics=("parallel", "arbitrary"),
            vmem_limit_bytes=vmem_limit,
        ),
        cost_estimate=cost,
    )(x, labels)

    # Tiny final reduction (drop padded rows, divide by the true batch size).
    return jnp.sum(per_row[:B, 0]) / jnp.float32(B)


if __name__ == "__main__":
    num_classes = 300   # deliberately not a multiple of 128 (exercises masking)
    batch = 20          # deliberately not a multiple of 8 (exercises padding)
    epsilon = 0.1

    key = jax.random.PRNGKey(0)
    k_x, k_t = jax.random.split(key)
    inputs = jax.random.normal(k_x, (batch, num_classes), dtype=jnp.float32)
    targets = jax.random.randint(k_t, (batch,), 0, num_classes, dtype=jnp.int32)

    # Small explicit tiles so the demo exercises the full (batch, class) grid,
    # the online-logsumexp path and the padding masks.
    loss = cross_entropy_label_smooth(inputs, targets, num_classes, epsilon,
                                      tile_b=8, tile_k=128)
    loss = jax.block_until_ready(loss)

    # plain-JAX reference
    log_probs = jax.nn.log_softmax(inputs, axis=1)
    onehot = jax.nn.one_hot(targets, num_classes, dtype=jnp.float32)
    smoothed = (1.0 - epsilon) * onehot + epsilon / num_classes
    ref = jnp.sum(jnp.mean(-smoothed * log_probs, axis=0))
    assert jnp.allclose(loss, ref, rtol=1e-5, atol=1e-5), (loss, ref)

    # Default (auto-sized single tile) path.
    loss2 = cross_entropy_label_smooth(inputs, targets, num_classes, epsilon)
    loss2 = jax.block_until_ready(loss2)
    assert jnp.allclose(loss2, ref, rtol=1e-5, atol=1e-5), (loss2, ref)

    # bf16 logits (halves HBM traffic; upcast happens inside the kernel).
    loss_bf16 = cross_entropy_label_smooth(
        inputs.astype(jnp.bfloat16), targets, num_classes, epsilon)
    loss_bf16 = jax.block_until_ready(loss_bf16)
    assert jnp.allclose(loss_bf16, ref, rtol=2e-2, atol=2e-2), (loss_bf16, ref)

    print("KERNEL_OK")
</pallas_src>

<mosaic_0001>
module attributes {stable_mosaic.version = 11 : i64} {
  func.func @_ce_label_smooth_kernel(%arg0: i32, %arg1: i32, %arg2: memref<8x128xf32, #tpu.memory_space<vmem>>, %arg3: memref<8x1xi32, #tpu.memory_space<vmem>>, %arg4: memref<8x1xf32, #tpu.memory_space<vmem>>, %arg5: memref<8x1xf32, #tpu.memory_space<vmem>>, %arg6: memref<8x1xf32, #tpu.memory_space<vmem>>, %arg7: memref<8x1xf32, #tpu.memory_space<vmem>>, %arg8: memref<8x1xf32, #tpu.memory_space<vmem>>) attributes {dimension_semantics = [#tpu.dimension_semantics<parallel>, #tpu.dimension_semantics<arbitrary>], iteration_bounds = array<i64: 3, 3>, scalar_prefetch = 0 : i64, scratch_operands = 4 : i64, tpu.core_type = #tpu.core_type<tc>, window_params = [{transform_indices = @transform_0, window_bounds = array<i64: 8, 128>}, {transform_indices = @transform_1, window_bounds = array<i64: 8, 1>}, {transform_indices = @transform_2, window_bounds = array<i64: 8, 1>}]} {
    %c0_i32 = arith.constant 0 : i32
    %0 = arith.cmpi eq, %arg1, %c0_i32 : i32
    %1 = arith.extui %0 : i1 to i32
    %c0_i32_0 = arith.constant 0 : i32
    %2 = arith.cmpi ne, %1, %c0_i32_0 : i32
    scf.if %2 {
      %cst_27 = arith.constant -2.38197633E+38 : f32
      %48 = vector.broadcast %cst_27 : f32 to vector<8x1xf32>
      %c0_28 = arith.constant 0 : index
      %c0_29 = arith.constant 0 : index
      %49 = vector.load %arg5[%c0_28, %c0_29] : memref<8x1xf32, #tpu.memory_space<vmem>>, vector<8x1xf32>
      tpu.vector_store %arg5[%c0_28, %c0_29], %48 {strides = array<i32>} : memref<8x1xf32, #tpu.memory_space<vmem>>, vector<8x1xf32>,
      %cst_30 = arith.constant 0.000000e+00 : f32
      %50 = vector.broadcast %cst_30 : f32 to vector<8x1xf32>
      %c0_31 = arith.constant 0 : index
      %c0_32 = arith.constant 0 : index
      %51 = vector.load %arg6[%c0_31, %c0_32] : memref<8x1xf32, #tpu.memory_space<vmem>>, vector<8x1xf32>
      tpu.vector_store %arg6[%c0_31, %c0_32], %50 {strides = array<i32>} : memref<8x1xf32, #tpu.memory_space<vmem>>, vector<8x1xf32>,
      %cst_33 = arith.constant 0.000000e+00 : f32
      %52 = vector.broadcast %cst_33 : f32 to vector<8x1xf32>
      %c0_34 = arith.constant 0 : index
      %c0_35 = arith.constant 0 : index
      %53 = vector.load %arg7[%c0_34, %c0_35] : memref<8x1xf32, #tpu.memory_space<vmem>>, vector<8x1xf32>
      tpu.vector_store %arg7[%c0_34, %c0_35], %52 {strides = array<i32>} : memref<8x1xf32, #tpu.memory_space<vmem>>, vector<8x1xf32>,
      %cst_36 = arith.constant 0.000000e+00 : f32
      %54 = vector.broadcast %cst_36 : f32 to vector<8x1xf32>
      %c0_37 = arith.constant 0 : index
      %c0_38 = arith.constant 0 : index
      %55 = vector.load %arg8[%c0_37, %c0_38] : memref<8x1xf32, #tpu.memory_space<vmem>>, vector<8x1xf32>
      tpu.vector_store %arg8[%c0_37, %c0_38], %54 {strides = array<i32>} : memref<8x1xf32, #tpu.memory_space<vmem>>, vector<8x1xf32>,
    } else {
    }
    %c0 = arith.constant 0 : index
    %c0_1 = arith.constant 0 : index
    %3 = vector.load %arg2[%c0, %c0_1] : memref<8x128xf32, #tpu.memory_space<vmem>>, vector<8x128xf32>
    %c0_2 = arith.constant 0 : index
    %c0_3 = arith.constant 0 : index
    %4 = vector.load %arg3[%c0_2, %c0_3] : memref<8x1xi32, #tpu.memory_space<vmem>>, vector<8x1xi32>
    %c128_i32 = arith.constant 128 : i32
    %5 = arith.muli %arg1, %c128_i32 : i32
    %6 = tpu.iota {dimensions = array<i32: 1>} : vector<8x128xi32>
    %7 = vector.broadcast %5 : i32 to vector<8x128xi32>
    %8 = arith.addi %7, %6 : vector<8x128xi32>
    %c300_i32 = arith.constant 300 : i32
    %9 = vector.broadcast %c300_i32 : i32 to vector<8x128xi32>
    %10 = arith.cmpi slt, %8, %9 : vector<8x128xi32>
    %cst = arith.constant -2.38197633E+38 : f32
    %11 = vector.broadcast %cst : f32 to vector<8x128xf32>
    %12 = arith.select %10, %3, %11 : vector<8x128xi1>, vector<8x128xf32>
    %cst_4 = arith.constant 0.000000e+00 : f32
    %13 = vector.broadcast %cst_4 : f32 to vector<8x128xf32>
    %14 = arith.select %10, %3, %13 : vector<8x128xi1>, vector<8x128xf32>
    %c0_5 = arith.constant 0 : index
    %c0_6 = arith.constant 0 : index
    %15 = vector.load %arg5[%c0_5, %c0_6] : memref<8x1xf32, #tpu.memory_space<vmem>>, vector<8x1xf32>
    %cst_7 = arith.constant dense<0xFF800000> : vector<8xf32>
    %16 = vector.multi_reduction <maximumf>, %12, %cst_7 [1] : vector<8x128xf32> to vector<8xf32>
    %17 = vector.shape_cast %16 : vector<8xf32> to vector<8x1xf32>
    %18 = arith.maximumf %15, %17 : vector<8x1xf32>
    %c0_8 = arith.constant 0 : index
    %c0_9 = arith.constant 0 : index
    %19 = vector.load %arg6[%c0_8, %c0_9] : memref<8x1xf32, #tpu.memory_space<vmem>>, vector<8x1xf32>
    %20 = arith.subf %15, %18 : vector<8x1xf32>
    %21 = math.exp %20 : vector<8x1xf32>
    %22 = arith.mulf %19, %21 : vector<8x1xf32>
    %23 = vector.broadcast %18 : vector<8x1xf32> to vector<8x128xf32>
    %24 = arith.subf %12, %23 : vector<8x128xf32>
    %25 = math.exp %24 : vector<8x128xf32>
    %cst_10 = arith.constant dense<0.000000e+00> : vector<8xf32>
    %26 = vector.multi_reduction <add>, %25, %cst_10 [1] : vector<8x128xf32> to vector<8xf32>
    %27 = vector.shape_cast %26 : vector<8xf32> to vector<8x1xf32>
    %28 = arith.addf %22, %27 : vector<8x1xf32>
    %c0_11 = arith.constant 0 : index
    %c0_12 = arith.constant 0 : index
    %29 = vector.load %arg6[%c0_11, %c0_12] : memref<8x1xf32, #tpu.memory_space<vmem>>, vector<8x1xf32>
    tpu.vector_store %arg6[%c0_11, %c0_12], %28 {strides = array<i32>} : memref<8x1xf32, #tpu.memory_space<vmem>>, vector<8x1xf32>,
    %c0_13 = arith.constant 0 : index
    %c0_14 = arith.constant 0 : index
    %30 = vector.load %arg5[%c0_13, %c0_14] : memref<8x1xf32, #tpu.memory_space<vmem>>, vector<8x1xf32>
    tpu.vector_store %arg5[%c0_13, %c0_14], %18 {strides = array<i32>} : memref<8x1xf32, #tpu.memory_space<vmem>>, vector<8x1xf32>,
    %c0_15 = arith.constant 0 : index
    %c0_16 = arith.constant 0 : index
    %31 = vector.load %arg7[%c0_15, %c0_16] : memref<8x1xf32, #tpu.memory_space<vmem>>, vector<8x1xf32>
    %cst_17 = arith.constant dense<0.000000e+00> : vector<8xf32>
    %32 = vector.multi_reduction <add>, %14, %cst_17 [1] : vector<8x128xf32> to vector<8xf32>
    %33 = vector.shape_cast %32 : vector<8xf32> to vector<8x1xf32>
    %34 = arith.addf %31, %33 : vector<8x1xf32>
    %c0_18 = arith.constant 0 : index
    %c0_19 = arith.constant 0 : index
    %35 = vector.load %arg7[%c0_18, %c0_19] : memref<8x1xf32, #tpu.memory_space<vmem>>, vector<8x1xf32>
    tpu.vector_store %arg7[%c0_18, %c0_19], %34 {strides = array<i32>} : memref<8x1xf32, #tpu.memory_space<vmem>>, vector<8x1xf32>,
    %c0_20 = arith.constant 0 : index
    %c0_21 = arith.constant 0 : index
    %36 = vector.load %arg8[%c0_20, %c0_21] : memref<8x1xf32, #tpu.memory_space<vmem>>, vector<8x1xf32>
    %37 = vector.broadcast %4 : vector<8x1xi32> to vector<8x128xi32>
    %38 = arith.cmpi eq, %8, %37 : vector<8x128xi32>
    %cst_22 = arith.constant 0.000000e+00 : f32
    %39 = vector.broadcast %cst_22 : f32 to vector<8x128xf32>
    %40 = arith.select %38, %3, %39 : vector<8x128xi1>, vector<8x128xf32>
    %cst_23 = arith.constant dense<0.000000e+00> : vector<8xf32>
    %41 = vector.multi_reduction <add>, %40, %cst_23 [1] : vector<8x128xf32> to vector<8xf32>
    %42 = vector.shape_cast %41 : vector<8xf32> to vector<8x1xf32>
    %43 = arith.addf %36, %42 : vector<8x1xf32>
    %c0_24 = arith.constant 0 : index
    %c0_25 = arith.constant 0 : index
    %44 = vector.load %arg8[%c0_24, %c0_25] : memref<8x1xf32, #tpu.memory_space<vmem>>, vector<8x1xf32>
    tpu.vector_store %arg8[%c0_24, %c0_25], %43 {strides = array<i32>} : memref<8x1xf32, #tpu.memory_space<vmem>>, vector<8x1xf32>,
    %c2_i32 = arith.constant 2 : i32
    %45 = arith.cmpi eq, %arg1, %c2_i32 : i32
    %46 = arith.extui %45 : i1 to i32
    %c0_i32_26 = arith.constant 0 : i32
    %47 = arith.cmpi ne, %46, %c0_i32_26 : i32
    scf.if %47 {
      %c0_27 = arith.constant 0 : index
      %c0_28 = arith.constant 0 : index
      %48 = vector.load %arg5[%c0_27, %c0_28] : memref<8x1xf32, #tpu.memory_space<vmem>>, vector<8x1xf32>
      %c0_29 = arith.constant 0 : index
      %c0_30 = arith.constant 0 : index
      %49 = vector.load %arg6[%c0_29, %c0_30] : memref<8x1xf32, #tpu.memory_space<vmem>>, vector<8x1xf32>
      %50 = math.log %49 : vector<8x1xf32>
      %51 = arith.addf %48, %50 : vector<8x1xf32>
      %c0_31 = arith.constant 0 : index
      %c0_32 = arith.constant 0 : index
      %52 = vector.load %arg8[%c0_31, %c0_32] : memref<8x1xf32, #tpu.memory_space<vmem>>, vector<8x1xf32>
      %cst_33 = arith.constant 0.899999976 : f32
      %53 = vector.broadcast %cst_33 : f32 to vector<8x1xf32>
      %54 = arith.mulf %53, %52 : vector<8x1xf32>
      %55 = arith.subf %51, %54 : vector<8x1xf32>
      %c0_34 = arith.constant 0 : index
      %c0_35 = arith.constant 0 : index
      %56 = vector.load %arg7[%c0_34, %c0_35] : memref<8x1xf32, #tpu.memory_space<vmem>>, vector<8x1xf32>
      %cst_36 = arith.constant 3.3333333E-4 : f32
      %57 = vector.broadcast %cst_36 : f32 to vector<8x1xf32>
      %58 = arith.mulf %57, %56 : vector<8x1xf32>
      %59 = arith.subf %55, %58 : vector<8x1xf32>
      %c0_37 = arith.constant 0 : index
      %c0_38 = arith.constant 0 : index
      %60 = vector.load %arg4[%c0_37, %c0_38] : memref<8x1xf32, #tpu.memory_space<vmem>>, vector<8x1xf32>
      tpu.vector_store %arg4[%c0_37, %c0_38], %59 {strides = array<i32>} : memref<8x1xf32, #tpu.memory_space<vmem>>, vector<8x1xf32>,
    } else {
    }
    return
  }
  func.func @transform_0(%arg0: i32, %arg1: i32) -> (i32, i32) {
    %c0_i32 = arith.constant 0 : i32
    return %arg0, %arg1 : i32, i32
  }
  func.func @transform_1(%arg0: i32, %arg1: i32) -> (i32, i32) {
    %c0_i32 = arith.constant 0 : i32
    %c0_i32_0 = arith.constant 0 : i32
    return %arg0, %c0_i32 : i32, i32
  }
  func.func @transform_2(%arg0: i32, %arg1: i32) -> (i32, i32) {
    %c0_i32 = arith.constant 0 : i32
    %c0_i32_0 = arith.constant 0 : i32
    return %arg0, %c0_i32 : i32, i32
  }
}

</mosaic_0001>

<bundles_post_ra>
// kernel: tpu_custom_call.1
= control target key start
LH: loop header
LB: loop body
LE: loop exit
PB: predicated region body
PF: predicated region fallthrough
CT: control target
= control target key end

     0   :  { %7 = vsyncpa [#allocation7], 0  ;;  %s707_s0 = inlined_call_operand.hbm [shape: f32[24,384], index: 0, kind: input, shape index: {}]   ;;  %s708_s1 = inlined_call_operand.vmem [shape: s32[24,1], index: 1, kind: input, shape index: {}]   ;;  %s709_s2 = inlined_call_operand.vmem [shape: f32[24,1], index: 2, kind: output, shape index: {}]  }
   0x1   :  { %9 = vsyncpa [#allocation7 + $0x1], 0  ;;  %s568_s9 = smov 0   ;;  %s570_s10 = smov 0  }
   0x2   :  { %s572_s11 = smov 0   ;;  %s574_s12 = smov 0  }
   0x3   :  { %s576_s13 = smov 0   ;;  %s578_s14 = smov 0  }
   0x4   :  { %s580_s15 = smov 0   ;;  %s582_s16 = smov 0  }
   0x5 LB: > { %s355_s17 = sadd.s32 4294967295, %s547_s16   ;;  %s24_s18 = sadd.s32 1, %s539_s14  ;;  %s547_s16 = sphi %s582_s16, %s15_s16   ;;  %s543_s15 = sphi %s580_s15, %s719_s15   ;;  %s539_s14 = sphi %s578_s14, %s718_s14   ;;  %s535_s13 = sphi %s576_s13, %s717_s13   ;;  %s531_s12 = sphi %s574_s12, %s716_s12   ;;  %s527_s11 = sphi %s572_s11, %s715_s11   ;;  %s523_s10 = sphi %s570_s10, %s714_s10   ;;  %s519_s9 = sphi %s568_s9, %s713_s9  }
   0x6   : > { %p25_p0 = scmp.ge.s32.totalorder %s24_s18, 3  ;;  %s27_s19 = sadd.s32 1, %s543_s15 }
   0x7   : > { %s36_s20 = sadd.s32 1, %s527_s11  ;;  %p43_p1 = scmp.ne.s32.totalorder %s527_s11, %s523_s10 }
   0x8   : > { %s721_s18 = smov (%p25_p0, %s24_s18), 0  ;;  %s723_s19 = smov (!%p25_p0, %s27_s19), %s543_s15 }
   0x9   : > { %s32_s21 = ssub.s32 %s539_s14, %s721_s18  ;;  %p44_p2 = scmp.eq.s32.totalorder %s547_s16, 0 }
   0xa   : > { %p29_p3 = scmp.ge.s32.totalorder %s723_s19, 3  ;;  %p49_p4 = scmp.ne.s32.totalorder %s523_s10, %s519_s9 }
   0xb   : > { %p619_p5 = por %p44_p2, %p43_p1  ;;  %p50_p6 = scmp.eq.s32.totalorder %s355_s17, 0 }
   0xc   : > { %s725_s19 = smov (%p29_p3, %s723_s19), 0  ;;  %p377_p8 = scmp.lt.s32.totalorder %s547_s16, 9 }
   0xd   : > { %p625_p7 = por %p50_p6, %p49_p4  ;;  %s31_s24 = ssub.s32 %s543_s15, %s725_s19 }
   0xe   : > { %s33_s25 = sor.u32 %s32_s21, %s31_s24  ;;  %s125_s26 = sand.u32 1, %s527_s11  }
   0xf   : > { %p34_p9 = scmp.eq.s32.totalorder %s33_s25, 0  ;;  %s359_s27 = sshll.u32 %s125_s26, 3 }
  0x10   : > { %s370_s28 = smul.u32 3, %s543_s15  ;;  %s129_s4 = scalar_lea.vmem [#allocation6], %s359_s27 }
  0x11   : > { %s635_s29 = scalar_select %p34_p9, %s527_s11, %s36_s20  }
  0x12   : > { %s134_s30 = sadd.s32 %s539_s14, %s370_s28  ;;  %s138_s5 = sshll.u32 %s129_s4, 4  ;;  %s139_s5 = int_to_ptr.vmem [resolvable:$true] %s138_s5 }
  0x13   : > { %s360_s3 = sshll.u32 %s134_s30, 7  ;;  %p645_p10 = pnand %p377_p8, %p619_p5 }
  0x14   : > { %s136_s8 = scalar_lea.hbm %s707_s0, %s360_s3  ;;  %p361_p11 = scmp.ge.s32.totalorder %s547_s16, 1 }
  0x15   : > { %p150_p12 = scmp.lt.s32.totalorder %s547_s16, 10  ;;  %s126_s17 = scalar_lea.sflag [#allocation7], %s125_s26 }
  0x16   : > { %p455_p13 = pneg %p645_p10  ;;  %s466_s20 = scalar_lea.vmem %s139_s5, 128 }
  0x17   : > { %p467_p0 = scmp.ne.s32.totalorder %s139_s5, %s466_s20  ;;  %s549_s21 = smov [#allocation6]  }
  0x18   : > { %s471_s24 = sshll.u32 %s549_s21, 4  ;;  %s472_s24 = int_to_ptr.vmem [resolvable:$false] %s471_s24 }
  0x19   : > { %p469_p1 = pnand %p467_p0, %p455_p13  ;;  %s473_s25 = scalar_lea.vmem %s472_s24, 256 }
  0x1a   : > { %p474_p3 = scmp.lt.s32.totalorder %s139_s5, %s472_s24  ;;  %p475_p4 = scmp.lt.s32.totalorder %s473_s25, %s466_s20 }
  0x1b   : > { %p470_p2 = pneg %p469_p1 }
  0x1c   : > { %p476_p5 = por %p475_p4, %p474_p3 }
  0x1e   : > { %p477_p6 = pnand %p476_p5, %p470_p2 }
  0x20   : > { %480 = shalt.err (!%p477_p6)
}
  0x21   : > { %376 = dma.hbm_to_vmem [thread:$0]  (!%p645_p10), %s136_s8, 128, %s139_s5, %s126_s17  }
  0x22   : > { %p151_p8 = pnand %p361_p11, %p150_p12 }
  0x23   : > { %s156_s22 = sand.u32 (!%p151_p8), 1, %s523_s10  }
  0x24   : > { %154 = sbr.rel (%p151_p8) target bundleno = 513 (0x201), region = 28  ;;  %s362_s26 = sshll.u32 (!%p151_p8), %s156_s22, 3 }
  0x25   : > { %s157_s27 = scalar_lea.sflag (!%p151_p8), [#allocation7], %s156_s22  ;;  %s160_s28 = scalar_lea.vmem (!%p151_p8), [#allocation6], %s362_s26 }
  0x29   : > { %514 = dma.done.wait (%p625_p7), %s157_s27, 128  }
  0x2a   : > { %516 = vsyncadd (%p625_p7), %s157_s27, 4294967168  ;;  %p184_p9 = scmp.lt.s32.totalorder %s535_s13, 2  ;;  %p365_p10 = scmp.ne.s32.totalorder %s531_s12, 0 }
  0x2c   : > { %s727_s13 = smov (!%p184_p9, %s535_s13), 2  ;;  %195 = sbr.rel (%p365_p10) target bundleno = 52 (0x34), region = 36 }
  0x2d   : > { %s363_s30 = sshll.u32 %s727_s13, 3 }
  0x2e   : > { %s187_s5 = scalar_lea.vmem %s708_s1, %s363_s30  ;;  %s672_s8 = scalar_lea.vmem %s709_s2, %s363_s30 }
  0x31   : > { %vm196_vm0 = vcmask 7168   ;;  %v550_v0 = vmov -2.3819763e+38   ;;  %v551_v1 = vmov 0.0  }
  0x32   : > { %197 = vst.msk [vmem:[#allocation2] sm:$0xff] %vm196_vm0, %v550_v0  ;;  %198 = vst.msk [vmem:[#allocation3] sm:$0xff] %vm196_vm0, %v551_v1 }
  0x33   : > { %199 = vst.msk [vmem:[#allocation4] sm:$0xff] %vm196_vm0, %v551_v1  ;;  %200 = vst.msk [vmem:[#allocation5] sm:$0xff] %vm196_vm0, %v551_v1 }
  0x34 PF: > { %s366_s13 = sshll.u32 %s531_s12, 7  ;;  %v204_v2 = vlaneseq  ;;  %v201_v5 = vld [vmem:[%s160_s28] sm:$0xff]  ;;  %v552_v8 = vmov 0   ;;  %vm231_vm2 = vcmask 7168   ;;  %p367_p7 = scmp.ne.s32.totalorder %s531_s12, 2 }
  0x35   : > { %v206_v3 = vstv %s366_s13  ;;  %445 = vset.pattern.permute.xlu0 %v552_v8  ;;  %446 = vset.pattern.permute.xlu1 %v552_v8  ;;  %v202_v9 = vld [vmem:[%s187_s5] sm:$0xff] }
  0x36   : > { %v205_v4 = vand.u32 127, %v204_v2  ;;  %241 = vperm.xlu1 %446, %v202_v9  }
  0x38   : > { %v207_v6 = vadd.s32 %v206_v3, %v205_v4 }
  0x39   : > { %v211_v10 = vld [vmem:[#allocation2] sm:$0xff]  ;;  %v215_v26 = vld [vmem:[#allocation3] sm:$0xff] }
  0x3a   : > { %vm208_vm1 = vcmp.lt.s32.totalorder %v207_v6, 300  ;;  %v234_v19 = vld [vmem:[#allocation4] sm:$0xff]  ;;  %v239_v30 = vld [vmem:[#allocation5] sm:$0xff] }
  0x3b   : > { %v209_v7 = vsel %vm208_vm1, %v201_v5, -2.3819763e+38  ;;  %v210_v14 = vsel %vm208_vm1, %v201_v5, 0.0 }
  0x3c   : > { %212 = vmax.xlane.f32.xlu0 %v209_v7 }
  0x5a   : > { %235 = vadd.xlane.f32.xlu1 %v210_v14 }
  0xb1   : > { %v242_v18 = vpop.permute.xlu1 %241 }
  0xb2   : > { %vm243_vm3 = vcmp.eq.s32.totalorder %v207_v6, %v242_v18 }
  0xb3   : > { %v244_v23 = vsel %vm243_vm3, %v201_v5, 0.0 }
  0xc5   : > { %v213_v11 = vpop.xlane.xlu0 %212 }
  0xc6   : > { %v214_v12 = vmax.f32 %v211_v10, %v213_v11 }
  0xc8   : > { %v216_v13 = vsub.f32 %v211_v10, %v214_v12  ;;  %233 = vst.msk [vmem:[#allocation2] sm:$0xff] %vm231_vm2, %v214_v12  ;;  %222 = vperm.xlu0 %445, %v214_v12  }
  0xca   : > { %v217_v24 = vmul.f32 1.442695, %v216_v13 }
  0xe3   : > { %v236_v20 = vpop.xlane.xlu1 %235 }
  0xe4   : > { %v237_v21 = vadd.f32 %v236_v20, %v234_v19 }
  0xe6   : > { %238 = vst.msk [vmem:[#allocation4] sm:$0xff] %vm231_vm2, %v237_v21 }
 0x143   : > { %v223_v15 = vpop.permute.xlu0 %222 }
 0x144   : > { %v225_v16 = vsub.f32 %v209_v7, %v223_v15 }
 0x146   : > { %v226_v17 = vmul.f32 1.442695, %v225_v16 }
 0x148   : > { %447 = vpow2.f32 %v226_v17 }
 0x149   : > { %449 = vpow2.f32 %v217_v24 }
 0x155   : > { %v448_v22 = vpop.eup %447 }
 0x156   : > { %228 = vadd.xlane.f32.xlu1 %v448_v22  ;;  %v450_v25 = vpop.eup %449 }
 0x157   : > { %v219_v27 = vmul.f32 %v450_v25, %v215_v26 }
 0x15a   : > { %245 = vadd.xlane.f32.xlu1 %v244_v23 }
 0x1df   : > { %v229_v28 = vpop.xlane.xlu1 %228 }
 0x1e0   : > { %v230_v29 = vadd.f32 %v229_v28, %v219_v27 }
 0x1e2   : > { %232 = vst.msk [vmem:[#allocation3] sm:$0xff] %vm231_vm2, %v230_v29  ;;  %252 = sbr.rel (%p367_p7) target bundleno = 513 (0x201), region = 40 }
 0x1e3   : > { %v246_v31 = vpop.xlane.xlu1 %245 }
 0x1e4   : > { %v247_v32 = vadd.f32 %v246_v31, %v239_v30 }
 0x1e6   : > { %248 = vst.msk [vmem:[#allocation5] sm:$0xff] %vm231_vm2, %v247_v32 }
 0x1e7   : > { %v253_v36 = vld [vmem:[#allocation2] sm:$0xff]  ;;  %v261_v37 = vld [vmem:[#allocation4] sm:$0xff] }
 0x1e8   : > { %v262_v41 = vmul.f32 0.00033333333, %v261_v37 }
 0x1e9   : > { %v254_v33 = vld [vmem:[#allocation3] sm:$0xff] }
 0x1ea   : > { %451 = vlog2.f32 %v254_v33 }
 0x1ed   : > { %v258_v34 = vld [vmem:[#allocation5] sm:$0xff] }
 0x1ee   : > { %v259_v39 = vmul.f32 0.9, %v258_v34 }
 0x1f7   : > { %v452_v35 = vpop.eup %451 }
 0x1f8   : > { %v256_v38 = vmul.f32 0.6931472, %v452_v35 }
 0x1fa   : > { %v257_v40 = vadd.f32 %v256_v38, %v253_v36 }
 0x1fc   : > { %v260_v42 = vsub.f32 %v257_v40, %v259_v39 }
 0x1fe   : > { %v263_v43 = vsub.f32 %v260_v42, %v262_v41 }
 0x200   : > { %264 = vst.msk [vmem:[%s672_s8] sm:$0xff] %vm231_vm2, %v263_v43 }
 0x201 PF: > { %s15_s16 = sadd.s32 1, %s547_s16   ;;  %s713_s9 = smov %s523_s10 }
 0x202   : > { %p12_p11 = scmp.ge.s32.totalorder %s15_s16, 11   ;;  %s714_s10 = smov %s527_s11 }
 0x203   : > { %s715_s11 = smov %s635_s29  ;;  %s716_s12 = smov %s539_s14 }
 0x204   : > { %s717_s13 = smov %s543_s15  ;;  %s718_s14 = smov %s721_s18 }
 0x205   : > { %s719_s15 = smov %s725_s19  ;;  %14 = sbr.rel (!%p12_p11) target bundleno = 5 (0x5), region = 79 }
 0x20a   :  { %284 = vsyncpa [#allocation7], 1 }
 0x20b   :  { %286 = vsyncpa [#allocation7 + $0x1], 1 }

</bundles_post_ra>
